<compile_context>
chip_gen: v7x
topology: tpu7x:2x2x1
jax: 0.10.0
libtpu: 0.0.40
codegen_flags: <defaults>
</compile_context>

<pallas_src>
import functools

import jax
import jax.numpy as jnp
from jax.experimental import pallas as pl
from jax.experimental.pallas import tpu as pltpu


# ----------------------------------------------------------------------------
# Kernel
# ----------------------------------------------------------------------------

def _rmsnorm_kernel(x_ref, w_ref, o_ref, *, eps):
    # x_ref: [tm, C] (input dtype); w_ref: [1, C] (weight dtype, f32 here).
    x = x_ref[...]
    xf = x.astype(jnp.float32)                                  # x.float()
    ms = jnp.mean(xf * xf, axis=-1, keepdims=True)              # mean(x^2, -1)
    y = xf * jax.lax.rsqrt(ms + eps)                            # _norm(x)
    y = y.astype(x_ref.dtype)                                   # .type_as(x)
    o_ref[...] = (y * w_ref[...]).astype(o_ref.dtype)           # * weight


# ----------------------------------------------------------------------------
# Tiling helpers
# ----------------------------------------------------------------------------

def _sublane_multiple(dtype):
    """Dtype-native packed sublane multiple: f32 -> 8, bf16 -> 16, i8/fp8 -> 32."""
    return max(8, 32 // jnp.dtype(dtype).itemsize)


def _vmem_budget_bytes():
    """Single generation-aware VMEM number, used for BOTH tile sizing and the
    compiler's vmem_limit_bytes.  ~half of physical VMEM leaves headroom for
    Mosaic internal scratch and avoids spills on v7x (64 MiB) while letting
    v5e/v6e (128 MiB) use MiB-class tiles."""
    try:
        cap = int(pltpu.get_tpu_info().vmem_capacity_bytes)
    except Exception:
        cap = 64 * 1024 * 1024          # conservative fallback (v7x-class VMEM)
    return max(16 * 1024 * 1024, cap // 2)


def _pick_row_tile(M, C, x_dtype, out_dtype, *, vmem_budget):
    """Largest sublane-aligned row tile whose double-buffered in/out tiles plus
    the in-kernel f32 temporaries fit `vmem_budget`, with the grid forced to
    >= 4 steps (>= 2 for small M) so DMA overlaps compute and the row axis can
    shard across both TensorCores on v7x."""
    x_item = jnp.dtype(x_dtype).itemsize
    o_item = jnp.dtype(out_dtype).itemsize
    sub = max(_sublane_multiple(x_dtype), _sublane_multiple(out_dtype))

    # Per-row VMEM: 2x (double-buffered) input + output tiles, plus the two
    # whole-tile f32 values (xf, y) the kernel materializes.
    per_row = C * (2 * (x_item + o_item) + 2 * 4)
    fit = max(sub, int(vmem_budget // per_row))

    if M <= 2 * sub:
        # Too few rows to split into >=2 aligned tiles; a full-extent block is
        # the only legal (and still lane-dense) choice.
        return M

    # Never emit a 1-step grid: it serializes DMA/compute and defeats megacore.
    min_grid = 4 if M > 4 * sub else 2
    cap = max(sub, (pl.cdiv(M, min_grid) // sub) * sub)

    tm = min(fit, cap, M)
    return max(sub, (tm // sub) * sub)


# ----------------------------------------------------------------------------
# Wrapper
# ----------------------------------------------------------------------------

def wan_rms_norm(x, weight, *, eps=1e-5, out_dtype=None):
    """x: [B, L, C]; weight: [C].  Matches WanRMSNorm.forward.

    out_dtype=None keeps the output in x.dtype (deployed Wan checkpoints carry
    bf16 weights, so this matches and halves writeback on the bf16 path).
    Pass out_dtype=jnp.float32 to reproduce PyTorch's bf16*f32 promotion.
    """
    B, L, C = x.shape
    M = B * L
    x2d = x.reshape(M, C)
    w2d = weight.reshape(1, C)
    if out_dtype is None:
        out_dtype = x.dtype
    out_dtype = jnp.dtype(out_dtype)

    vmem_budget = _vmem_budget_bytes()
    tm = _pick_row_tile(M, C, x2d.dtype, out_dtype, vmem_budget=vmem_budget)
    grid = (pl.cdiv(M, tm),)

    out2d = pl.pallas_call(
        functools.partial(_rmsnorm_kernel, eps=eps),
        out_shape=jax.ShapeDtypeStruct((M, C), out_dtype),
        grid_spec=pltpu.PrefetchScalarGridSpec(
            num_scalar_prefetch=0,
            grid=grid,
            in_specs=[
                # x row tile.  (If xprof shows exposed input DMA at the final
                # tile size, add pipeline_mode=pl.Buffered(3) here.)
                pl.BlockSpec((tm, C), lambda i: (i, 0)),
                # weight: same block every step -> stays resident in VMEM.
                pl.BlockSpec((1, C), lambda i: (0, 0)),
            ],
            out_specs=pl.BlockSpec((tm, C), lambda i: (i, 0)),
        ),
        compiler_params=pltpu.CompilerParams(
            # Rows are independent -> megacore-shardable on v7x.
            dimension_semantics=("parallel",),
            # Same number used to size the tiles above.
            vmem_limit_bytes=vmem_budget,
        ),
        cost_estimate=pl.CostEstimate(
            flops=4 * M * C,
            transcendentals=M,
            bytes_accessed=(x2d.size * x2d.dtype.itemsize
                            + w2d.size * w2d.dtype.itemsize
                            + M * C * out_dtype.itemsize),
        ),
    )(x2d, w2d)
    return out2d.reshape(B, L, C)


# ----------------------------------------------------------------------------
# Pure-JAX reference (mirrors the PyTorch forward exactly, incl. promotion)
# ----------------------------------------------------------------------------

def wan_rms_norm_ref(x, weight, eps=1e-5):
    xf = x.astype(jnp.float32)
    y = xf * jax.lax.rsqrt(jnp.mean(xf * xf, axis=-1, keepdims=True) + eps)
    return y.astype(x.dtype) * weight


# ----------------------------------------------------------------------------

if __name__ == "__main__":
    B, L, C = 2, 256, 128           # small [B, L, C]; C lane-dense, grid > 1
    eps = 1e-5                      # WanRMSNorm default eps

    key = jax.random.PRNGKey(0)
    kx, kw = jax.random.split(key)
    x = jax.random.normal(kx, (B, L, C), jnp.float32)
    weight = 1.0 + 0.1 * jax.random.normal(kw, (C,), jnp.float32)

    # --- f32 path (exercises a multi-step grid: M=512 rows, tm<=128) --------
    out = jax.block_until_ready(wan_rms_norm(x, weight, eps=eps))
    ref = wan_rms_norm_ref(x, weight, eps)
    assert out.shape == (B, L, C)
    assert out.dtype == ref.dtype
    assert bool(jnp.all(jnp.isfinite(out)))
    assert float(jnp.max(jnp.abs(out - ref))) < 1e-4

    # --- bf16 path, bf16 output (default: halves writeback traffic) --------
    xb = x.astype(jnp.bfloat16)
    outb = jax.block_until_ready(wan_rms_norm(xb, weight, eps=eps))
    refb = wan_rms_norm_ref(xb, weight, eps).astype(jnp.bfloat16)
    assert outb.dtype == jnp.bfloat16
    assert float(jnp.max(jnp.abs(outb.astype(jnp.float32)
                                 - refb.astype(jnp.float32)))) < 1e-1

    # --- bf16 path, strict PyTorch promotion (f32 output) ------------------
    outb32 = jax.block_until_ready(
        wan_rms_norm(xb, weight, eps=eps, out_dtype=jnp.float32))
    refb32 = wan_rms_norm_ref(xb, weight, eps)
    assert outb32.dtype == refb32.dtype == jnp.float32
    assert float(jnp.max(jnp.abs(outb32 - refb32))) < 1e-4

    print("KERNEL_OK")
</pallas_src>

<mosaic_0001>
module attributes {stable_mosaic.version = 11 : i64} {
  func.func @_rmsnorm_kernel(%arg0: i32, %arg1: memref<128x128xf32, #tpu.memory_space<vmem>>, %arg2: memref<1x128xf32, #tpu.memory_space<vmem>>, %arg3: memref<128x128xf32, #tpu.memory_space<vmem>>) attributes {dimension_semantics = [#tpu.dimension_semantics<parallel>], iteration_bounds = array<i64: 4>, scalar_prefetch = 0 : i64, scratch_operands = 0 : i64, tpu.core_type = #tpu.core_type<tc>, window_params = [{transform_indices = @transform_0, window_bounds = array<i64: 128, 128>}, {pipeline_mode = #tpu.pipeline_mode<synchronous>, transform_indices = @transform_1, window_bounds = array<i64: 1, 128>}, {transform_indices = @transform_2, window_bounds = array<i64: 128, 128>}]} {
    %c0 = arith.constant 0 : index
    %c0_0 = arith.constant 0 : index
    %0 = vector.load %arg1[%c0, %c0_0] : memref<128x128xf32, #tpu.memory_space<vmem>>, vector<128x128xf32>
    %1 = arith.mulf %0, %0 : vector<128x128xf32>
    %cst = arith.constant dense<0.000000e+00> : vector<128xf32>
    %2 = vector.multi_reduction <add>, %1, %cst [1] : vector<128x128xf32> to vector<128xf32>
    %3 = vector.shape_cast %2 : vector<128xf32> to vector<128x1xf32>
    %cst_1 = arith.constant 1.280000e+02 : f32
    %4 = vector.broadcast %cst_1 : f32 to vector<128x1xf32>
    %5 = arith.divf %3, %4 : vector<128x1xf32>
    %cst_2 = arith.constant 9.99999974E-6 : f32
    %6 = vector.broadcast %cst_2 : f32 to vector<128x1xf32>
    %7 = arith.addf %5, %6 : vector<128x1xf32>
    %8 = math.rsqrt %7 : vector<128x1xf32>
    %9 = vector.broadcast %8 : vector<128x1xf32> to vector<128x128xf32>
    %10 = arith.mulf %0, %9 : vector<128x128xf32>
    %c0_3 = arith.constant 0 : index
    %c0_4 = arith.constant 0 : index
    %11 = vector.load %arg2[%c0_3, %c0_4] : memref<1x128xf32, #tpu.memory_space<vmem>>, vector<1x128xf32>
    %12 = vector.broadcast %11 : vector<1x128xf32> to vector<128x128xf32>
    %13 = arith.mulf %10, %12 : vector<128x128xf32>
    %c0_5 = arith.constant 0 : index
    %c0_6 = arith.constant 0 : index
    %14 = vector.load %arg3[%c0_5, %c0_6] : memref<128x128xf32, #tpu.memory_space<vmem>>, vector<128x128xf32>
    tpu.vector_store %arg3[%c0_5, %c0_6], %13 {strides = array<i32>} : memref<128x128xf32, #tpu.memory_space<vmem>>, vector<128x128xf32>,
    return
  }
  func.func @transform_0(%arg0: i32) -> (i32, i32) {
    %c0_i32 = arith.constant 0 : i32
    %c0_i32_0 = arith.constant 0 : i32
    return %arg0, %c0_i32 : i32, i32
  }
  func.func @transform_1(%arg0: i32) -> (i32, i32) {
    %c0_i32 = arith.constant 0 : i32
    %c0_i32_0 = arith.constant 0 : i32
    %c0_i32_1 = arith.constant 0 : i32
    return %c0_i32, %c0_i32_0 : i32, i32
  }
  func.func @transform_2(%arg0: i32) -> (i32, i32) {
    %c0_i32 = arith.constant 0 : i32
    %c0_i32_0 = arith.constant 0 : i32
    return %arg0, %c0_i32 : i32, i32
  }
}

</mosaic_0001>

<bundles_post_ra>
// kernel: tpu_custom_call.1
= control target key start
LH: loop header
LB: loop body
LE: loop exit
PB: predicated region body
PF: predicated region fallthrough
CT: control target
= control target key end

     0   :  { %7 = vsyncpa [#allocation3], 0  ;;  %s939_s0 = inlined_call_operand.hbm [shape: f32[512,128], index: 0, kind: input, shape index: {}]   ;;  %s940_s1 = inlined_call_operand.vmem [shape: f32[1,128], index: 1, kind: input, shape index: {}]   ;;  %s941_s2 = inlined_call_operand.hbm [shape: f32[512,128], index: 2, kind: output, shape index: {}]  }
   0x1   :  { %9 = vsyncpa [#allocation3 + $0x1], 0 }
   0x2   :  { %10 = vsyncpa [#allocation4], 0 }
   0x3   :  { %12 = vsyncpa [#allocation4 + $0x1], 0  ;;  %s637_s9 = smov 0   ;;  %s639_s10 = smov 0  }
   0x4   :  { %s641_s11 = smov 0   ;;  %s643_s12 = smov 0  }
   0x5 LB: > { %s658_s13 = sadd.s32 4294967295, %s614_s12   ;;  %s419_s14 = sadd.s32 4294967294, %s614_s12   ;;  %s614_s12 = sphi %s643_s12, %s953_s12   ;;  %s610_s11 = sphi %s641_s11, %s952_s11   ;;  %s606_s10 = sphi %s639_s10, %s951_s10   ;;  %s602_s9 = sphi %s637_s9, %s950_s9  }
   0x6   : > { %s662_s15 = sadd.s32 1, %s614_s12   ;;  %s25_s16 = sadd.s32 1, %s610_s11 }
   0x7   : > { %s22_s17 = ssub.s32 %s614_s12, %s662_s15  ;;  %p32_p0 = scmp.ne.s32.totalorder %s610_s11, %s606_s10 }
   0x8   : > { %p23_p1 = scmp.eq.s32.totalorder %s22_s17, 0  ;;  %p33_p2 = scmp.eq.s32.totalorder %s614_s12, 0 }
   0x9   : > { %p38_p3 = scmp.ne.s32.totalorder %s606_s10, %s602_s9  ;;  %p39_p4 = scmp.eq.s32.totalorder %s658_s13, 0 }
   0xa   : > { %s674_s18 = scalar_select %p23_p1, %s610_s11, %s25_s16  }
   0xb   : > { %p676_p5 = por %p33_p2, %p32_p0  ;;  %p680_p6 = por %p39_p4, %p38_p3 }
   0xc   : > { %p83_p7 = scmp.eq.s32.totalorder %s658_s13, 3  ;;  %p89_p8 = scmp.eq.s32.totalorder %s419_s14, 3 }
   0xd   : > { %p448_p9 = scmp.lt.s32.totalorder %s614_s12, 4  ;;  %s112_s23 = sand.u32 1, %s610_s11  }
   0xe   : > { %p686_p10 = por %p83_p7, %p32_p0  ;;  %p690_p11 = por %p89_p8, %p38_p3 }
   0xf   : > { %s434_s24 = sshll.u32 %s614_s12, 11  ;;  %s422_s25 = sshll.u32 %s112_s23, 7 }
  0x10   : > { %s945_s21 = scalar_select %p686_p10, 1, 0 }
  0x11   : > { %s946_s22 = scalar_select %p690_p11, 1, 0 }
  0x12   : > { %s699_s28 = scalar_lea.hbm %s939_s0, %s434_s24  ;;  %s116_s29 = scalar_lea.vmem [#allocation2], %s422_s25 }
  0x13   : > { %s123_s30 = sshll.u32 %s116_s29, 4  ;;  %p703_p12 = pnand %p448_p9, %p676_p5  ;;  %s707_s30 = int_to_ptr.vmem [resolvable:$true] %s123_s30 }
  0x14   : > { %s709_s4 = scalar_lea.sflag [#allocation3], %s112_s23  ;;  %s518_s5 = scalar_lea.hbm %s699_s28, 2048 }
  0x15   : > { %p519_p13 = scmp.ne.s32.totalorder %s699_s28, %s518_s5  ;;  %p520_p0 = pneg %p703_p12 }
  0x16   : > { %s523_s8 = scalar_lea.hbm %s939_s0, 8192  ;;  %p524_p3 = scmp.lt.u32.totalorder %s699_s28, %s939_s0 }
  0x17   : > { %p521_p1 = pnand %p520_p0, %p519_p13  ;;  %p525_p4 = scmp.lt.u32.totalorder %s523_s8, %s518_s5 }
  0x18   : > { %p527_p7 = scmp.lt.u32.totalorder %s518_s5, %s699_s28 }
  0x19   : > { %p522_p2 = pneg %p521_p1  ;;  %p526_p5 = por %p525_p4, %p524_p3 }
  0x1b   : > { %p528_p8 = por %p527_p7, %p526_p5 }
  0x1d   : > { %p529_p9 = pnand %p528_p8, %p522_p2 }
  0x1f   : > { %532 = shalt.err (!%p529_p9)
}
  0x20   : > { %s533_s17 = scalar_lea.vmem %s707_s30, 2048  ;;  %s616_s19 = smov [#allocation2]  }
  0x21   : > { %p534_p13 = scmp.ne.s32.totalorder %s707_s30, %s533_s17  ;;  %s538_s23 = sshll.u32 %s616_s19, 4  ;;  %s539_s23 = int_to_ptr.vmem [resolvable:$false] %s538_s23 }
  0x22   : > { %s540_s24 = scalar_lea.vmem %s539_s23, 4096  ;;  %p541_p10 = scmp.lt.s32.totalorder %s707_s30, %s539_s23 }
  0x23   : > { %p536_p1 = pnand %p534_p13, %p520_p0  ;;  %p542_p3 = scmp.lt.s32.totalorder %s540_s24, %s533_s17 }
  0x25   : > { %p537_p11 = pneg %p536_p1  ;;  %p543_p4 = por %p542_p3, %p541_p10 }
  0x27   : > { %p544_p5 = pnand %p543_p4, %p537_p11 }
  0x29   : > { %547 = shalt.err (!%p544_p5)
}
  0x2a   : > { %s617_s25 = smov 128   ;;  %s618_s26 = smov 8  }
  0x2b   : > { %443 = dma.hbm_to_vmem [thread:$0]  (!%p703_p12), %s699_s28, 2048, %s707_s30, %s709_s4, %s617_s25, %s617_s25, %s618_s26  }
  0x2c   : > { %p425_p0 = scmp.ge.s32.totalorder %s614_s12, 1  ;;  %p131_p2 = scmp.lt.s32.totalorder %s614_s12, 5 }
  0x2e   : > { %p132_p7 = pnand %p425_p0, %p131_p2 }
  0x2f   : > { %s740_s27 = sand.u32 (!%p132_p7), 1, %s606_s10  }
  0x30   : > { %135 = sbr.rel (%p132_p7) target bundleno = 264 (0x108), region = 28  ;;  %s426_s29 = sshll.u32 (!%p132_p7), %s740_s27, 7 }
  0x31   : > { %s138_s5 = scalar_lea.sflag (!%p132_p7), [#allocation3], %s740_s27  ;;  %s746_s6 = scalar_lea.vmem (!%p132_p7), [#allocation2], %s426_s29 }
  0x37   : > { %593 = dma.done.wait (%p680_p6), %s138_s5, 2048  }
  0x38   : > { %595 = vsyncadd (%p680_p6), %s138_s5, 4294965248  ;;  %v753_v0 = vld [vmem:[%s746_s6 + $0x10] sm:$0xff]  ;;  %v756_v1 = vld [vmem:[%s746_s6] sm:$0xff]  ;;  %s843_s30 = scalar_lea.vmem [#allocation5], %s426_s29  ;;  %s435_s3 = sshll.u32 %s658_s13, 11 }
  0x39   : > { %v759_v2 = vld [vmem:[%s746_s6 + $0x18] sm:$0xff]  ;;  %v182_v3 = vmul.f32 %v753_v0, %v753_v0  ;;  %v180_v4 = vmul.f32 %v756_v1, %v756_v1  ;;  %v766_v5 = vld [vmem:[%s746_s6 + $0x8] sm:$0xff]  ;;  %v776_v9 = vld [vmem:[%s746_s6 + $0x20] sm:$0xff]  ;;  %s346_s4 = sshll.u32 %s843_s30, 4  ;;  %s891_s14 = scalar_lea.hbm %s941_s2, %s435_s3  ;;  %s893_s4 = int_to_ptr.vmem [resolvable:$true] %s346_s4 }
  0x3a   : > { %v183_v6 = vmul.f32 %v759_v2, %v759_v2  ;;  %v181_v7 = vmul.f32 %v766_v5, %v766_v5  ;;  %v773_v8 = vld [vmem:[%s746_s6 + $0x28] sm:$0xff]  ;;  %v184_v11 = vmul.f32 %v776_v9, %v776_v9  ;;  %v783_v12 = vld [vmem:[%s746_s6 + $0x38] sm:$0xff]  ;;  %v786_v13 = vld [vmem:[%s746_s6 + $0x30] sm:$0xff]  ;;  %s333_s13 = scalar_lea.sflag [#allocation4], %s740_s27  ;;  %s548_s16 = scalar_lea.vmem %s893_s4, 2048 }
  0x3b   : > { %200 = vadd.xlane.f32.xlu1 %v182_v3  ;;  %196 = vadd.xlane.f32.xlu0 %v180_v4  ;;  %v185_v10 = vmul.f32 %v773_v8, %v773_v8  ;;  %v187_v14 = vmul.f32 %v783_v12, %v783_v12  ;;  %v186_v15 = vmul.f32 %v786_v13, %v786_v13  ;;  %v793_v16 = vld [vmem:[%s746_s6 + $0x48] sm:$0xff]  ;;  %v796_v17 = vld [vmem:[%s746_s6 + $0x40] sm:$0xff]  ;;  %v803_v20 = vld [vmem:[%s746_s6 + $0x58] sm:$0xff]  ;;  %p549_p6 = scmp.ne.s32.totalorder %s893_s4, %s548_s16  ;;  %p948_p10 = scmp.ne.s32.totalorder %s945_s21, 0 }
  0x3c   : > { %v189_v18 = vmul.f32 %v793_v16, %v793_v16  ;;  %v188_v19 = vmul.f32 %v796_v17, %v796_v17  ;;  %v806_v21 = vld [vmem:[%s746_s6 + $0x50] sm:$0xff]  ;;  %v191_v22 = vmul.f32 %v803_v20, %v803_v20  ;;  %v813_v24 = vld [vmem:[%s746_s6 + $0x68] sm:$0xff]  ;;  %v816_v25 = vld [vmem:[%s746_s6 + $0x60] sm:$0xff]  ;;  %s619_s17 = smov [#allocation5]  }
  0x3d   : > { %v190_v23 = vmul.f32 %v806_v21, %v806_v21  ;;  %v193_v26 = vmul.f32 %v813_v24, %v813_v24  ;;  %v192_v27 = vmul.f32 %v816_v25, %v816_v25  ;;  %v823_v28 = vld [vmem:[%s746_s6 + $0x78] sm:$0xff]  ;;  %v826_v29 = vld [vmem:[%s746_s6 + $0x70] sm:$0xff]  ;;  %v835_v55 = vld [vmem:[%s940_s1] ss:$0 sm:$0xff]  ;;  %p550_p11 = pnand %p549_p6, %p948_p10  ;;  %s552_s19 = sshll.u32 %s619_s17, 4  ;;  %s553_s19 = int_to_ptr.vmem [resolvable:$false] %s552_s19 }
  0x3e   : > { %v195_v30 = vmul.f32 %v823_v28, %v823_v28  ;;  %v194_v31 = vmul.f32 %v826_v29, %v826_v29  ;;  %s554_s23 = scalar_lea.vmem %s553_s19, 4096  ;;  %p555_p8 = scmp.lt.s32.totalorder %s893_s4, %s553_s19 }
  0x3f   : > { %202 = vadd.xlane.f32.xlu1 %v183_v6  ;;  %198 = vadd.xlane.f32.xlu0 %v181_v7  ;;  %p551_p12 = pneg %p550_p11  ;;  %p556_p9 = scmp.lt.s32.totalorder %s554_s23, %s548_s16 }
  0x41   : > { %p557_p13 = por %p556_p9, %p555_p8 }
  0x43   : > { %206 = vadd.xlane.f32.xlu1 %v185_v10  ;;  %204 = vadd.xlane.f32.xlu0 %v184_v11  ;;  %p558_p1 = pnand %p557_p13, %p551_p12 }
  0x47   : > { %210 = vadd.xlane.f32.xlu1 %v187_v14  ;;  %208 = vadd.xlane.f32.xlu0 %v186_v15 }
  0x4b   : > { %214 = vadd.xlane.f32.xlu1 %v189_v18  ;;  %212 = vadd.xlane.f32.xlu0 %v188_v19 }
  0x4f   : > { %218 = vadd.xlane.f32.xlu1 %v191_v22  ;;  %216 = vadd.xlane.f32.xlu0 %v190_v23 }
  0x53   : > { %222 = vadd.xlane.f32.xlu1 %v193_v26  ;;  %220 = vadd.xlane.f32.xlu0 %v192_v27 }
  0x57   : > { %226 = vadd.xlane.f32.xlu1 %v195_v30  ;;  %224 = vadd.xlane.f32.xlu0 %v194_v31 }
  0xc8   : > { %v201_v32 = vpop.xlane.xlu1 %200  ;;  %v197_v33 = vpop.xlane.xlu0 %196 }
  0xc9   : > { %v231_v34 = vmul.f32 0.0078125, %v201_v32  ;;  %v229_v35 = vmul.f32 0.0078125, %v197_v33 }
  0xcb   : > { %v247_v36 = vadd.f32 1e-05, %v231_v34  ;;  %v245_v37 = vadd.f32 1e-05, %v229_v35 }
  0xcc   : > { %v203_v38 = vpop.xlane.xlu1 %202  ;;  %v199_v39 = vpop.xlane.xlu0 %198 }
  0xcd   : > { %486 = vrsqrt.f32 %v247_v36  ;;  %v232_v40 = vmul.f32 0.0078125, %v203_v38  ;;  %v230_v41 = vmul.f32 0.0078125, %v199_v39 }
  0xce   : > { %488 = vrsqrt.f32 %v245_v37 }
  0xcf   : > { %v248_v42 = vadd.f32 1e-05, %v232_v40  ;;  %v246_v43 = vadd.f32 1e-05, %v230_v41 }
  0xd0   : > { %v207_v44 = vpop.xlane.xlu1 %206  ;;  %v205_v45 = vpop.xlane.xlu0 %204 }
  0xd1   : > { %490 = vrsqrt.f32 %v248_v42  ;;  %v234_v46 = vmul.f32 0.0078125, %v207_v44  ;;  %v233_v47 = vmul.f32 0.0078125, %v205_v45 }
  0xd2   : > { %492 = vrsqrt.f32 %v246_v43 }
  0xd3   : > { %v250_v48 = vadd.f32 1e-05, %v234_v46  ;;  %v249_v49 = vadd.f32 1e-05, %v233_v47 }
  0xd4   : > { %v211_v50 = vpop.xlane.xlu1 %210  ;;  %v209_v51 = vpop.xlane.xlu0 %208 }
  0xd5   : > { %494 = vrsqrt.f32 %v250_v48  ;;  %v236_v52 = vmul.f32 0.0078125, %v211_v50  ;;  %v235_v53 = vmul.f32 0.0078125, %v209_v51 }
  0xd6   : > { %496 = vrsqrt.f32 %v249_v49 }
  0xd7   : > { %v487_v54 = vpop.eup %486  ;;  %v252_v56 = vadd.f32 1e-05, %v236_v52  ;;  %v251_v57 = vadd.f32 1e-05, %v235_v53 }
  0xd8   : > { %v489_v58 = vpop.eup %488  ;;  %v279_v59 = vmul.f32 %v487_v54, %v753_v0  ;;  %v215_v60 = vpop.xlane.xlu1 %214 }
  0xd9   : > { %v213_v61 = vpop.xlane.xlu0 %212  ;;  %v277_v62 = vmul.f32 %v489_v58, %v756_v1  ;;  %498 = vrsqrt.f32 %v252_v56  ;;  %v238_v63 = vmul.f32 0.0078125, %v215_v60 }
  0xda   : > { %v237_v3 = vmul.f32 0.0078125, %v213_v61  ;;  %v302_v4 = vmul.f32 %v835_v55, %v279_v59  ;;  %500 = vrsqrt.f32 %v251_v57 }
  0xdb   : > { %v491_v6 = vpop.eup %490  ;;  %v300_v7 = vmul.f32 %v835_v55, %v277_v62  ;;  %v254_v10 = vadd.f32 1e-05, %v238_v63 }
  0xdc   : > { %v253_v11 = vadd.f32 1e-05, %v237_v3  ;;  %v493_v14 = vpop.eup %492  ;;  %318 = vst [vmem:[%s843_s30 + $0x10] sm:$0xff] %v302_v4  ;;  %v280_v0 = vmul.f32 %v491_v6, %v759_v2  ;;  %v219_v1 = vpop.xlane.xlu1 %218 }
  0xdd   : > { %v217_v15 = vpop.xlane.xlu0 %216  ;;  %316 = vst [vmem:[%s843_s30] sm:$0xff] %v300_v7  ;;  %v278_v18 = vmul.f32 %v493_v14, %v766_v5  ;;  %502 = vrsqrt.f32 %v254_v10  ;;  %v240_v19 = vmul.f32 0.0078125, %v219_v1 }
  0xde   : > { %v239_v22 = vmul.f32 0.0078125, %v217_v15  ;;  %v303_v23 = vmul.f32 %v835_v55, %v280_v0  ;;  %504 = vrsqrt.f32 %v253_v11 }
  0xdf   : > { %v495_v26 = vpop.eup %494  ;;  %v301_v27 = vmul.f32 %v835_v55, %v278_v18  ;;  %v256_v30 = vadd.f32 1e-05, %v240_v19 }
  0xe0   : > { %v255_v31 = vadd.f32 1e-05, %v239_v22  ;;  %v497_v32 = vpop.eup %496  ;;  %319 = vst [vmem:[%s843_s30 + $0x18] sm:$0xff] %v303_v23  ;;  %v282_v2 = vmul.f32 %v495_v26, %v773_v8  ;;  %v223_v33 = vpop.xlane.xlu1 %222 }
  0xe1   : > { %v221_v34 = vpop.xlane.xlu0 %220  ;;  %317 = vst [vmem:[%s843_s30 + $0x8] sm:$0xff] %v301_v27  ;;  %v281_v5 = vmul.f32 %v497_v32, %v776_v9  ;;  %506 = vrsqrt.f32 %v256_v30  ;;  %v242_v35 = vmul.f32 0.0078125, %v223_v33 }
  0xe2   : > { %v241_v36 = vmul.f32 0.0078125, %v221_v34  ;;  %v305_v37 = vmul.f32 %v835_v55, %v282_v2  ;;  %508 = vrsqrt.f32 %v255_v31 }
  0xe3   : > { %v499_v38 = vpop.eup %498  ;;  %v304_v39 = vmul.f32 %v835_v55, %v281_v5  ;;  %v258_v40 = vadd.f32 1e-05, %v242_v35 }
  0xe4   : > { %v257_v41 = vadd.f32 1e-05, %v241_v36  ;;  %v501_v42 = vpop.eup %500  ;;  %321 = vst [vmem:[%s843_s30 + $0x28] sm:$0xff] %v305_v37  ;;  %v284_v8 = vmul.f32 %v499_v38, %v783_v12  ;;  %v227_v43 = vpop.xlane.xlu1 %226 }
  0xe5   : > { %v225_v44 = vpop.xlane.xlu0 %224  ;;  %320 = vst [vmem:[%s843_s30 + $0x20] sm:$0xff] %v304_v39  ;;  %v283_v9 = vmul.f32 %v501_v42, %v786_v13  ;;  %510 = vrsqrt.f32 %v258_v40  ;;  %v244_v45 = vmul.f32 0.0078125, %v227_v43 }
  0xe6   : > { %v243_v46 = vmul.f32 0.0078125, %v225_v44  ;;  %v307_v47 = vmul.f32 %v835_v55, %v284_v8  ;;  %512 = vrsqrt.f32 %v257_v41 }
  0xe7   : > { %v503_v48 = vpop.eup %502  ;;  %v306_v49 = vmul.f32 %v835_v55, %v283_v9  ;;  %v260_v50 = vadd.f32 1e-05, %v244_v45 }
  0xe8   : > { %v259_v51 = vadd.f32 1e-05, %v243_v46  ;;  %v505_v12 = vpop.eup %504  ;;  %323 = vst [vmem:[%s843_s30 + $0x38] sm:$0xff] %v307_v47  ;;  %v286_v52 = vmul.f32 %v503_v48, %v793_v16 }
  0xe9   : > { %322 = vst [vmem:[%s843_s30 + $0x30] sm:$0xff] %v306_v49  ;;  %v285_v13 = vmul.f32 %v505_v12, %v796_v17  ;;  %514 = vrsqrt.f32 %v260_v50 }
  0xea   : > { %v309_v53 = vmul.f32 %v835_v55, %v286_v52  ;;  %516 = vrsqrt.f32 %v259_v51 }
  0xeb   : > { %v507_v54 = vpop.eup %506  ;;  %v308_v56 = vmul.f32 %v835_v55, %v285_v13 }
  0xec   : > { %v509_v57 = vpop.eup %508  ;;  %325 = vst [vmem:[%s843_s30 + $0x48] sm:$0xff] %v309_v53  ;;  %v288_v58 = vmul.f32 %v507_v54, %v803_v20 }
  0xed   : > { %324 = vst [vmem:[%s843_s30 + $0x40] sm:$0xff] %v308_v56  ;;  %v287_v16 = vmul.f32 %v509_v57, %v806_v21 }
  0xee   : > { %v311_v17 = vmul.f32 %v835_v55, %v288_v58 }
  0xef   : > { %v511_v59 = vpop.eup %510  ;;  %v310_v60 = vmul.f32 %v835_v55, %v287_v16 }
  0xf0   : > { %v513_v61 = vpop.eup %512  ;;  %327 = vst [vmem:[%s843_s30 + $0x58] sm:$0xff] %v311_v17  ;;  %v290_v62 = vmul.f32 %v511_v59, %v813_v24 }
  0xf1   : > { %326 = vst [vmem:[%s843_s30 + $0x50] sm:$0xff] %v310_v60  ;;  %v289_v63 = vmul.f32 %v513_v61, %v816_v25 }
  0xf2   : > { %v313_v20 = vmul.f32 %v835_v55, %v290_v62 }
  0xf3   : > { %v515_v3 = vpop.eup %514  ;;  %v312_v21 = vmul.f32 %v835_v55, %v289_v63 }
  0xf4   : > { %v517_v4 = vpop.eup %516  ;;  %329 = vst [vmem:[%s843_s30 + $0x68] sm:$0xff] %v313_v20  ;;  %v292_v6 = vmul.f32 %v515_v3, %v823_v28 }
  0xf5   : > { %328 = vst [vmem:[%s843_s30 + $0x60] sm:$0xff] %v312_v21  ;;  %v291_v24 = vmul.f32 %v517_v4, %v826_v29 }
  0xf6   : > { %v315_v7 = vmul.f32 %v835_v55, %v292_v6 }
  0xf7   : > { %v314_v25 = vmul.f32 %v835_v55, %v291_v24 }
  0xf8   : > { %331 = vst [vmem:[%s843_s30 + $0x78] sm:$0xff] %v315_v7 }
  0xf9   : > { %330 = vst [vmem:[%s843_s30 + $0x70] sm:$0xff] %v314_v25 }
  0xfa   : > { %561 = shalt.err (!%p558_p1)
}
  0xfb   : > { %s562_s24 = scalar_lea.hbm %s891_s14, 2048  ;;  %s566_s29 = scalar_lea.hbm %s941_s2, 8192 }
  0xfc   : > { %p563_p3 = scmp.ne.s32.totalorder %s891_s14, %s562_s24  ;;  %p567_p0 = scmp.lt.u32.totalorder %s891_s14, %s941_s2 }
  0xfd   : > { %p568_p2 = scmp.lt.u32.totalorder %s566_s29, %s562_s24  ;;  %p570_p6 = scmp.lt.u32.totalorder %s562_s24, %s891_s14 }
  0xfe   : > { %p564_p4 = pnand %p563_p3, %p948_p10 }
  0xff   : > { %p569_p7 = por %p568_p2, %p567_p0 }
 0x100   : > { %p565_p5 = pneg %p564_p4 }
 0x101   : > { %p571_p11 = por %p570_p6, %p569_p7 }
 0x103   : > { %p572_p12 = pnand %p571_p11, %p565_p5 }
 0x105   : > { %575 = shalt.err (!%p572_p12)
}
 0x106   : > { %s620_s20 = smov 128   ;;  %s621_s28 = smov 8  }
 0x107   : > { %438 = dma.vmem_to_hbm [thread:$0]  (%p948_p10), %s893_s4, 2048, %s891_s14, %s333_s13, %s620_s20, %s620_s20, %s621_s28  }
 0x108 PF: > { %p449_p8 = scmp.ge.s32.totalorder %s614_s12, 2  ;;  %s361_s30 = sand.u32 1, %s602_s9  }
 0x109   : > { %p949_p9 = scmp.ne.s32.totalorder %s946_s22, 0  ;;  %s362_s3 = scalar_lea.sflag [#allocation4], %s361_s30 }
 0x10b   : > { %p445_p13 = pnand %p449_p8, %p949_p9 }
 0x10d   : > { %597 = dma.done.wait (!%p445_p13), %s362_s3, 2048  }
 0x10e   : > { %599 = vsyncadd (!%p445_p13), %s362_s3, 4294965248  ;;  %p15_p1 = scmp.ge.s32.totalorder %s662_s15, 6   ;;  %s950_s9 = smov %s606_s10 }
 0x10f   : > { %s951_s10 = smov %s610_s11  ;;  %s952_s11 = smov %s674_s18 }
 0x110   : > { %s953_s12 = smov %s662_s15  ;;  %17 = sbr.rel (!%p15_p1) target bundleno = 5 (0x5), region = 73 }
 0x117   :  { %367 = vsyncpa [#allocation3], 1 }
 0x118   :  { %369 = vsyncpa [#allocation3 + $0x1], 1 }
 0x119   :  { %370 = vsyncpa [#allocation4], 1 }
 0x11a   :  { %372 = vsyncpa [#allocation4 + $0x1], 1 }

</bundles_post_ra>
